<compile_context>
chip_gen: v6e
topology: v6e:2x2x1
jax: 0.10.0
libtpu: 0.0.40
codegen_flags: <defaults>
</compile_context>

<pallas_src>
import jax
import jax.numpy as jnp
from jax.experimental import pallas as pl
from jax.experimental.pallas import tpu as pltpu

IN_FEATURES = 30 * 30 * 3          # 2700
HIDDEN = 128
OUT_FEATURES = 5
N_PAD = 128                        # lane-dense output width for fc2
TM_MAX = 1024                      # batch tile (see VMEM accounting above)
VMEM_LIMIT_BYTES = 40 * 1024 * 1024


def _round_up(n, m):
    return ((n + m - 1) // m) * m


def _choose_tm(batch):
    """Batch tile: multiple of 16, >=2 tiles when batch > 16 (v7x megacore)."""
    if batch <= 16:
        return _round_up(max(batch, 1), 16)
    half = -(-batch // 2)                      # ceil(batch / 2)
    return min(TM_MAX, _round_up(half, 16))


def mlp_kernel(x_ref, w1_ref, b1_ref, w2_ref, b2_ref, o_ref):
    # x_ref:  (TM, 2700) f32      w1_ref: (2700, 128) bf16    b1_ref: (1, 128) f32
    # w2_ref: (128, N_PAD) bf16   b2_ref: (1, N_PAD) f32      o_ref:  (TM, N_PAD) f32
    #
    # x arrives as f32 straight from HBM; cast to bf16 on-chip (VPU) so the
    # wrapper never materializes a converted copy in HBM.
    x = x_ref[...].astype(jnp.bfloat16)
    # fc1 on the MXU (bf16 operands, f32 accumulation) + bias + ReLU.
    # Elementwise path stays f32 (v5e's VPU has no bf16).
    h = jnp.dot(x, w1_ref[...], preferred_element_type=jnp.float32) + b1_ref[...]
    h = jnp.maximum(h, 0.0)
    # fc2 on the MXU, lane-dense (N_PAD) output so stores are unmasked vst.
    y = jnp.dot(h.astype(jnp.bfloat16), w2_ref[...],
                preferred_element_type=jnp.float32) + b2_ref[...]
    o_ref[...] = y.astype(o_ref.dtype)


def nn_forward(x, w1, b1, w2, b2):
    """x: (B, 3, 30, 30) float32 -> (B, 5) float32.

    w1: (2700, 128), b1: (1, 128), w2: (128, 5), b2: (1, 5)  (transposed
    relative to torch.nn.Linear so the kernel computes y = x @ W + b).
    """
    batch = x.shape[0]
    xf = x.reshape(batch, -1).astype(jnp.float32)   # same flatten order as torch .view(B, -1)

    tm = _choose_tm(batch)
    grid = (pl.cdiv(batch, tm),)

    # Tiny one-time weight prep (would be done at parameter-load time in a
    # real model): bf16 MXU operands, fc2 width padded to a full 128 lanes.
    w1p = w1.astype(jnp.bfloat16)                                   # (2700, 128)
    w2p = jnp.pad(w2, ((0, 0), (0, N_PAD - OUT_FEATURES))).astype(jnp.bfloat16)
    b1p = b1.astype(jnp.float32)
    b2p = jnp.pad(b2, ((0, 0), (0, N_PAD - OUT_FEATURES))).astype(jnp.float32)

    # Advisory cost: actual (memory-bound) traffic — f32 x read once, each
    # weight read once (resident), f32 padded output written once.
    flops = 2 * batch * (IN_FEATURES * HIDDEN + HIDDEN * N_PAD)
    bytes_accessed = (batch * IN_FEATURES * 4        # x (f32)
                      + IN_FEATURES * HIDDEN * 2     # w1 (bf16), resident
                      + HIDDEN * 4                   # b1
                      + HIDDEN * N_PAD * 2           # w2 (bf16), resident
                      + N_PAD * 4                    # b2
                      + batch * N_PAD * 4)           # out (f32)

    out_padded = pl.pallas_call(
        mlp_kernel,
        out_shape=jax.ShapeDtypeStruct((batch, N_PAD), jnp.float32),
        grid=grid,
        in_specs=[
            pl.BlockSpec((tm, IN_FEATURES), lambda i: (i, 0)),       # x: streamed per tile
            pl.BlockSpec((IN_FEATURES, HIDDEN), lambda i: (0, 0)),   # w1: resident
            pl.BlockSpec((1, HIDDEN), lambda i: (0, 0)),             # b1: resident
            pl.BlockSpec((HIDDEN, N_PAD), lambda i: (0, 0)),         # w2: resident
            pl.BlockSpec((1, N_PAD), lambda i: (0, 0)),              # b2: resident
        ],
        out_specs=pl.BlockSpec((tm, N_PAD), lambda i: (i, 0)),
        compiler_params=pltpu.CompilerParams(
            dimension_semantics=("parallel",),       # shard batch tiles across TCs (v7x)
            vmem_limit_bytes=VMEM_LIMIT_BYTES,
        ),
        cost_estimate=pl.CostEstimate(
            flops=flops, transcendentals=0, bytes_accessed=bytes_accessed),
    )(xf, w1p, b1p, w2p, b2p)

    # Strip the lane-padding of the 5-wide output (tail-block rows, if any,
    # never exist in the (batch, N_PAD) output array — OOB writes are masked).
    return out_padded[:, :OUT_FEATURES]


def init_params(key):
    """Deterministic init mimicking torch.nn.Linear (uniform +-1/sqrt(fan_in))."""
    k1, k2, k3, k4 = jax.random.split(key, 4)
    bound1 = 1.0 / jnp.sqrt(IN_FEATURES)
    bound2 = 1.0 / jnp.sqrt(HIDDEN)
    w1 = jax.random.uniform(k1, (IN_FEATURES, HIDDEN), jnp.float32,
                            minval=-bound1, maxval=bound1)
    b1 = jax.random.uniform(k2, (1, HIDDEN), jnp.float32,
                            minval=-bound1, maxval=bound1)
    w2 = jax.random.uniform(k3, (HIDDEN, OUT_FEATURES), jnp.float32,
                            minval=-bound2, maxval=bound2)
    b2 = jax.random.uniform(k4, (1, OUT_FEATURES), jnp.float32,
                            minval=-bound2, maxval=bound2)
    return w1, b1, w2, b2


if __name__ == "__main__":
    key = jax.random.PRNGKey(0)
    kx, kp = jax.random.split(key)

    batch = 2
    x = jax.random.normal(kx, (batch, 3, 30, 30), jnp.float32)  # NCHW, like torch
    w1, b1, w2, b2 = init_params(kp)

    out = nn_forward(x, w1, b1, w2, b2)
    out = jax.block_until_ready(out)
    assert out.shape == (batch, OUT_FEATURES)

    # Reference with the same bf16-operand / f32-accumulation math.
    xf = x.reshape(batch, -1)
    h_ref = jnp.dot(xf.astype(jnp.bfloat16), w1.astype(jnp.bfloat16),
                    preferred_element_type=jnp.float32) + b1
    h_ref = jnp.maximum(h_ref, 0.0)
    ref = jnp.dot(h_ref.astype(jnp.bfloat16), w2.astype(jnp.bfloat16),
                  preferred_element_type=jnp.float32) + b2
    assert jnp.allclose(out, ref, atol=1e-2, rtol=1e-2)

    # Also sanity-check against full-precision math (looser tolerance due to
    # bf16 MXU operands).
    ref_f32 = jnp.maximum(xf @ w1 + b1, 0.0) @ w2 + b2
    assert jnp.allclose(out, ref_f32, atol=5e-2, rtol=5e-2)

    print("KERNEL_OK")
</pallas_src>

<mosaic_0001>
module attributes {stable_mosaic.version = 11 : i64} {
  func.func @mlp_kernel(%arg0: i32, %arg1: memref<16x2700xf32, #tpu.memory_space<vmem>>, %arg2: memref<2700x128xbf16, #tpu.memory_space<vmem>>, %arg3: memref<1x128xf32, #tpu.memory_space<vmem>>, %arg4: memref<128x128xbf16, #tpu.memory_space<vmem>>, %arg5: memref<1x128xf32, #tpu.memory_space<vmem>>, %arg6: memref<16x128xf32, #tpu.memory_space<vmem>>) attributes {dimension_semantics = [#tpu.dimension_semantics<parallel>], iteration_bounds = array<i64: 1>, scalar_prefetch = 0 : i64, scratch_operands = 0 : i64, tpu.core_type = #tpu.core_type<tc>, window_params = [{transform_indices = @transform_0, window_bounds = array<i64: 16, 2700>}, {pipeline_mode = #tpu.pipeline_mode<synchronous>, transform_indices = @transform_1, window_bounds = array<i64: 2700, 128>}, {pipeline_mode = #tpu.pipeline_mode<synchronous>, transform_indices = @transform_2, window_bounds = array<i64: 1, 128>}, {pipeline_mode = #tpu.pipeline_mode<synchronous>, transform_indices = @transform_3, window_bounds = array<i64: 128, 128>}, {pipeline_mode = #tpu.pipeline_mode<synchronous>, transform_indices = @transform_4, window_bounds = array<i64: 1, 128>}, {transform_indices = @transform_5, window_bounds = array<i64: 16, 128>}]} {
    %c0 = arith.constant 0 : index
    %c0_0 = arith.constant 0 : index
    %0 = vector.load %arg1[%c0, %c0_0] : memref<16x2700xf32, #tpu.memory_space<vmem>>, vector<16x2700xf32>
    %1 = arith.truncf %0 : vector<16x2700xf32> to vector<16x2700xbf16>
    %c0_1 = arith.constant 0 : index
    %c0_2 = arith.constant 0 : index
    %2 = vector.load %arg2[%c0_1, %c0_2] : memref<2700x128xbf16, #tpu.memory_space<vmem>>, vector<2700x128xbf16>
    %cst = arith.constant dense<0.000000e+00> : vector<16x128xf32>
    %3 = tpu.matmul %1, %2, %cst {dimension_numbers = #tpu.dot_dimension_numbers<[1], [0], [0], [1], [0, 0, 1, 1], [], []>} : vector<16x2700xbf16>, vector<2700x128xbf16>, vector<16x128xf32> -> vector<16x128xf32>
    %c0_3 = arith.constant 0 : index
    %c0_4 = arith.constant 0 : index
    %4 = vector.load %arg3[%c0_3, %c0_4] : memref<1x128xf32, #tpu.memory_space<vmem>>, vector<1x128xf32>
    %5 = vector.broadcast %4 : vector<1x128xf32> to vector<16x128xf32>
    %6 = arith.addf %3, %5 : vector<16x128xf32>
    %cst_5 = arith.constant 0.000000e+00 : f32
    %7 = vector.broadcast %cst_5 : f32 to vector<16x128xf32>
    %8 = arith.maximumf %6, %7 : vector<16x128xf32>
    %9 = arith.truncf %8 : vector<16x128xf32> to vector<16x128xbf16>
    %c0_6 = arith.constant 0 : index
    %c0_7 = arith.constant 0 : index
    %10 = vector.load %arg4[%c0_6, %c0_7] : memref<128x128xbf16, #tpu.memory_space<vmem>>, vector<128x128xbf16>
    %cst_8 = arith.constant dense<0.000000e+00> : vector<16x128xf32>
    %11 = tpu.matmul %9, %10, %cst_8 {dimension_numbers = #tpu.dot_dimension_numbers<[1], [0], [0], [1], [0, 0, 1, 1], [], []>} : vector<16x128xbf16>, vector<128x128xbf16>, vector<16x128xf32> -> vector<16x128xf32>
    %c0_9 = arith.constant 0 : index
    %c0_10 = arith.constant 0 : index
    %12 = vector.load %arg5[%c0_9, %c0_10] : memref<1x128xf32, #tpu.memory_space<vmem>>, vector<1x128xf32>
    %13 = vector.broadcast %12 : vector<1x128xf32> to vector<16x128xf32>
    %14 = arith.addf %11, %13 : vector<16x128xf32>
    %c0_11 = arith.constant 0 : index
    %c0_12 = arith.constant 0 : index
    %15 = vector.load %arg6[%c0_11, %c0_12] : memref<16x128xf32, #tpu.memory_space<vmem>>, vector<16x128xf32>
    tpu.vector_store %arg6[%c0_11, %c0_12], %14 {strides = array<i32>} : memref<16x128xf32, #tpu.memory_space<vmem>>, vector<16x128xf32>,
    return
  }
  func.func @transform_0(%arg0: i32) -> (i32, i32) {
    %c0_i32 = arith.constant 0 : i32
    %c0_i32_0 = arith.constant 0 : i32
    return %arg0, %c0_i32 : i32, i32
  }
  func.func @transform_1(%arg0: i32) -> (i32, i32) {
    %c0_i32 = arith.constant 0 : i32
    %c0_i32_0 = arith.constant 0 : i32
    %c0_i32_1 = arith.constant 0 : i32
    return %c0_i32, %c0_i32_0 : i32, i32
  }
  func.func @transform_2(%arg0: i32) -> (i32, i32) {
    %c0_i32 = arith.constant 0 : i32
    %c0_i32_0 = arith.constant 0 : i32
    %c0_i32_1 = arith.constant 0 : i32
    return %c0_i32, %c0_i32_0 : i32, i32
  }
  func.func @transform_3(%arg0: i32) -> (i32, i32) {
    %c0_i32 = arith.constant 0 : i32
    %c0_i32_0 = arith.constant 0 : i32
    %c0_i32_1 = arith.constant 0 : i32
    return %c0_i32, %c0_i32_0 : i32, i32
  }
  func.func @transform_4(%arg0: i32) -> (i32, i32) {
    %c0_i32 = arith.constant 0 : i32
    %c0_i32_0 = arith.constant 0 : i32
    %c0_i32_1 = arith.constant 0 : i32
    return %c0_i32, %c0_i32_0 : i32, i32
  }
  func.func @transform_5(%arg0: i32) -> (i32, i32) {
    %c0_i32 = arith.constant 0 : i32
    %c0_i32_0 = arith.constant 0 : i32
    return %arg0, %c0_i32 : i32, i32
  }
}

</mosaic_0001>

<bundles_post_ra>
// kernel: tpu_custom_call.1
= control target key start
LH: loop header
LB: loop body
LE: loop exit
PB: predicated region body
PF: predicated region fallthrough
CT: control target
= control target key end

     0   :  { %10 = vsyncpa [#allocation3], 0  ;;  %s3466_s0 = inlined_call_operand.hbm [shape: f32[2,2700], index: 0, kind: input, shape index: {}]   ;;  %s3467_s1 = inlined_call_operand.hbm [shape: bf16[2700,128], index: 1, kind: input, shape index: {}]   ;;  %s3468_s2 = inlined_call_operand.vmem [shape: f32[1,128], index: 2, kind: input, shape index: {}]   ;;  %s3469_s3 = inlined_call_operand.hbm [shape: bf16[128,128], index: 3, kind: input, shape index: {}]   ;;  %s3470_s4 = inlined_call_operand.vmem [shape: f32[1,128], index: 4, kind: input, shape index: {}]   ;;  %s3471_s5 = inlined_call_operand.hbm [shape: f32[2,128], index: 5, kind: output, shape index: {}]  }
   0x1   :  { %11 = vsyncpa [#allocation6], 0 }
   0x2   :  { %12 = vsyncpa [#allocation4], 0 }
   0x3   :  { %17 = vsyncadd [#allocation3], 4928  ;;  %s3343_s18 = smov [#allocation5]  }
   0x4   :  { %s30_s19 = sshll.u32 %s3343_s18, 4  ;;  %s31_s19 = int_to_ptr.vmem [resolvable:$true] %s30_s19 }
   0x5   :  { %s3265_s20 = scalar_lea.vmem %s31_s19, 21632  ;;  %p3270_p1 = scmp.lt.s32.totalorder %s31_s19, %s31_s19 }
   0x6   :  { %p3266_p0 = scmp.ne.s32.totalorder %s31_s19, %s3265_s20  ;;  %p3271_p2 = scmp.lt.s32.totalorder %s3265_s20, %s3265_s20 }
   0x8   :  { %p3272_p3 = por %p3271_p2, %p3270_p1 }
   0xa   :  { %p3273_p4 = pnand %p3272_p3, %p3266_p0 }
   0xc   :  { %3276 = shalt.err (!%p3273_p4)
}
   0xd   :  { %s3344_s21 = smov 64   ;;  %s3345_s22 = smov 4  }
   0xe   :  { %36 = dma.hbm_to_vmem [thread:$0]  %s3467_s1, 21632, %s31_s19, [#allocation6], %s3344_s21, %s3344_s21, %s3345_s22  }
   0xf   :  { %s3346_s25 = smov [#allocation2]  }
  0x10   :  { %s18_s26 = sshll.u32 %s3346_s25, 4  ;;  %s19_s26 = int_to_ptr.vmem [resolvable:$true] %s18_s26 }
  0x11   :  { %s3285_s27 = scalar_lea.vmem %s19_s26, 704  ;;  %s3289_s28 = scalar_lea.vmem %s19_s26, 5632 }
  0x12   :  { %p3286_p5 = scmp.ne.s32.totalorder %s19_s26, %s3285_s27  ;;  %p3290_p6 = scmp.lt.s32.totalorder %s19_s26, %s19_s26 }
  0x13   :  { %p3291_p7 = scmp.lt.s32.totalorder %s3289_s28, %s3285_s27 }
  0x15   :  { %p3292_p8 = por %p3291_p7, %p3290_p6 }
  0x17   :  { %p3293_p9 = pnand %p3292_p8, %p3286_p5 }
  0x19   :  { %3296 = shalt.err (!%p3293_p9)
}
  0x1a   :  { %s3347_s29 = smov 704   ;;  %s3348_s30 = smov 44  }
  0x1b   :  { %24 = dma.hbm_to_vmem [thread:$0]  %s3466_s0, 704, %s19_s26, [#allocation3], %s3347_s29, %s3347_s29, %s3348_s30  }
  0x1c   :  { %s3349_s8 = smov [#allocation7]  }
  0x1d   :  { %s44_s9 = sshll.u32 %s3349_s8, 4  ;;  %s45_s9 = int_to_ptr.vmem [resolvable:$true] %s44_s9 }
  0x1e   :  { %s3305_s1 = scalar_lea.vmem %s45_s9, 1024  ;;  %p3310_p11 = scmp.lt.s32.totalorder %s45_s9, %s45_s9 }
  0x1f   :  { %p3306_p10 = scmp.ne.s32.totalorder %s45_s9, %s3305_s1  ;;  %p3311_p12 = scmp.lt.s32.totalorder %s3305_s1, %s3305_s1 }
  0x21   :  { %p3312_p13 = por %p3311_p12, %p3310_p11 }
  0x23   :  { %p3313_p0 = pnand %p3312_p13, %p3306_p10 }
  0x25   :  { %3316 = shalt.err (!%p3313_p0)
}
  0x26   :  { %50 = dma.hbm_to_vmem [thread:$0]  %s3469_s3, 1024, %s45_s9, [#allocation6], %s3344_s21, %s3344_s21, %s3345_s22  }
  0x27   :  { %3337 = dma.done.wait [#allocation3], 5632  }
  0x28   :  { %3338 = vsyncadd [#allocation3], 4294961664 }
  0x29   :  { %3339 = dma.done.wait [#allocation6], 22656  }
  0x2a   :  { %3340 = vsyncadd [#allocation6], 4294944640  ;;  %v3016_v0 = vld [vmem:[#allocation5 + $0x78] sm:$0xff]   ;;  %v3020_v4 = vld [vmem:[#allocation5 + $0x70] sm:$0xff]   ;;  %v3350_v24 = vmov 1983009808   ;;  %v166_v26 = vlaneseq }
  0x2b   :  { %v3017_v1 = vld [vmem:[#allocation5 + $0x38] sm:$0xff]   ;;  %2753 = vmatprep.subr.bf16.mxu0 %v3016_v0  ;;  %v3021_v5 = vld [vmem:[#allocation5 + $0x30] sm:$0xff]   ;;  %v3024_v8 = vld [vmem:[#allocation5 + $0x68] sm:$0xff]   ;;  %v164_v25 = vunpack.c.l.s4 %v3350_v24  ;;  %vm1979_vm0 = vcmask 97280   ;;  %vm1983_vm1 = vcmask 1045504   ;;  %vm3353_vm2 = vmmov 0  }
  0x2c   :  { %v3018_v2 = vld [vmem:[#allocation5 + $0xf8] sm:$0xff]   ;;  %2754 = vmatpush3.bf16.msra.mxu0 %v3017_v1  ;;  %v3022_v6 = vld [vmem:[#allocation5 + $0xf0] sm:$0xff]   ;;  %v3025_v9 = vld [vmem:[#allocation5 + $0x28] sm:$0xff]   ;;  %v167_v32 = vshrl.u32 %v166_v26, 7 }
  0x2d   :  { %v3019_v3 = vld [vmem:[#allocation5 + $0xb8] sm:$0xff]   ;;  %2775 = vmatprep.subr.bf16.mxu1 %v3018_v2  ;;  %2755 = vmatprep.subr.bf16.mxu0 %v3020_v4  ;;  %v3023_v7 = vld [vmem:[#allocation5 + $0xb0] sm:$0xff]   ;;  %v3026_v10 = vld [vmem:[#allocation5 + $0xe8] sm:$0xff]   ;;  %v165_v31 = vunpack.c.0.s8 %v164_v25 }
  0x2e   :  { %2776 = vmatpush3.bf16.msra.mxu1 %v3019_v3  ;;  %v3027_v11 = vld [vmem:[#allocation5 + $0xa8] sm:$0xff]   ;;  %v3028_v12 = vld [vmem:[#allocation5 + $0x60] sm:$0xff]   ;;  %v3032_v16 = vld [vmem:[#allocation5 + $0x58] sm:$0xff]  }
  0x2f   :  { %2777 = vmatprep.subr.bf16.mxu1 %v3022_v6  ;;  %v3029_v13 = vld [vmem:[#allocation5 + $0x20] sm:$0xff]   ;;  %v3033_v17 = vld [vmem:[#allocation5 + $0x18] sm:$0xff]   ;;  %v3036_v20 = vld [vmem:[#allocation5 + $0x50] sm:$0xff]   ;;  %v3402_v36 = vsub.s32 %v165_v31, %v167_v32 }
  0x30   :  { %2756 = vmatpush3.bf16.msra.mxu0 %v3021_v5  ;;  %v3030_v14 = vld [vmem:[#allocation5 + $0xe0] sm:$0xff]   ;;  %v3034_v18 = vld [vmem:[#allocation5 + $0xd8] sm:$0xff]   ;;  %v3037_v21 = vld [vmem:[#allocation5 + $0x10] sm:$0xff]  }
  0x31   :  { %2757 = vmatprep.subr.bf16.mxu0 %v3024_v8  ;;  %v3031_v15 = vld [vmem:[#allocation5 + $0xa0] sm:$0xff]   ;;  %v3035_v19 = vld [vmem:[#allocation5 + $0x98] sm:$0xff]   ;;  %v3038_v22 = vld [vmem:[#allocation5 + $0xd0] sm:$0xff]  }
  0x32   :  { %2778 = vmatpush3.bf16.msra.mxu1 %v3023_v7  ;;  %v3039_v23 = vld [vmem:[#allocation5 + $0x90] sm:$0xff]   ;;  %v3040_v27 = vld [vmem:[#allocation5 + $0x48] sm:$0xff]   ;;  %v3044_v33 = vld [vmem:[#allocation5 + $0x40] sm:$0xff]  }
  0x33   :  { %2779 = vmatprep.subr.bf16.mxu1 %v3026_v10  ;;  %v3041_v28 = vld [vmem:[#allocation5 + $0x8] sm:$0xff]   ;;  %v3045_v34 = vld [vmem:[#allocation5] sm:$0xff]   ;;  %v3051_v39 = vld [vmem:[#allocation2 + $0xb0] ss:$44 sps:$4 sm:$0xff]  }
  0x34   :  { %2758 = vmatpush3.bf16.msra.mxu0 %v3025_v9  ;;  %v3042_v29 = vld [vmem:[#allocation5 + $0xc8] sm:$0xff]   ;;  %v3046_v35 = vld [vmem:[#allocation5 + $0xc0] sm:$0xff]   ;;  %v367_v44 = vrot.slane %v3051_v39, %v3402_v36  ;;  %v3056_v46 = vld [vmem:[#allocation5 + $0x178] sm:$0xff]  }
  0x35   :  { %2759 = vmatprep.subr.bf16.mxu0 %v3028_v12  ;;  %v3043_v30 = vld [vmem:[#allocation5 + $0x88] sm:$0xff]   ;;  %v3049_v38 = vld [vmem:[#allocation2 + $0x58] ss:$44 sps:$4 sm:$0xff]   ;;  %v3059_v49 = vld [vmem:[#allocation2 + $0xb4] ss:$44 sps:$4 sm:$0xff]  }
  0x36   :  { %2780 = vmatpush3.bf16.msra.mxu1 %v3027_v11  ;;  %v3047_v37 = vld [vmem:[#allocation2] ss:$44 sps:$4 sm:$0xff]   ;;  %v3053_v40 = vld [vmem:[#allocation2 + $0x108] ss:$44 sps:$4 sm:$0xff]   ;;  %v183_v43 = vrot.slane %v3049_v38, %v3402_v36  ;;  %v3057_v47 = vld [vmem:[#allocation2 + $0x4] ss:$44 sps:$4 sm:$0xff]   ;;  %v374_v57 = vrot.slane %v3059_v49, %v3402_v36 }
  0x37   :  { %2781 = vmatprep.subr.bf16.mxu1 %v3030_v14  ;;  %v169_v41 = vrot.slane %v3047_v37, %v3402_v36  ;;  %v3055_v42 = vld [vmem:[#allocation5 + $0x80] sm:$0xff]   ;;  %v381_v45 = vrot.slane %v3053_v40, %v3402_v36  ;;  %v3058_v48 = vld [vmem:[#allocation2 + $0x5c] ss:$44 sps:$4 sm:$0xff]   ;;  %v3060_v54 = vld [vmem:[#allocation2 + $0x10c] ss:$44 sps:$4 sm:$0xff]   ;;  %v176_v55 = vrot.slane %v3057_v47, %v3402_v36 }
  0x38   :  { %2760 = vmatpush3.bf16.msra.mxu0 %v3029_v13  ;;  %v190_v56 = vrot.slane %v3058_v48, %v3402_v36  ;;  %v3061_v58 = vld [vmem:[#allocation5 + $0x138] sm:$0xff]   ;;  %v388_v61 = vrot.slane %v3060_v54, %v3402_v36  ;;  %v3064_v3 = vld [vmem:[#allocation5 + $0x170] sm:$0xff]   ;;  %v3068_v9 = vld [vmem:[#allocation5 + $0x168] sm:$0xff]  }
  0x39   :  { %2761 = vmatprep.subr.bf16.mxu0 %v3032_v16  ;;  %v192_v50 = vcombine.high %v169_v41, %v183_v43  ;;  %v390_v51 = vcombine.high %v367_v44, %v381_v45  ;;  %v191_v52 = vcombine.low %v169_v41, %v183_v43  ;;  %v389_v53 = vcombine.low %v367_v44, %v381_v45  ;;  %v3062_v62 = vld [vmem:[#allocation5 + $0x1f8] sm:$0xff]   ;;  %v3065_v7 = vld [vmem:[#allocation5 + $0x130] sm:$0xff]   ;;  %v3069_v11 = vld [vmem:[#allocation5 + $0x128] sm:$0xff]  }
  0x3a   :  { %2782 = vmatpush3.bf16.msra.mxu1 %v3031_v15  ;;  %v194_v63 = vcombine.high %v176_v55, %v190_v56  ;;  %v193_v0 = vcombine.low %v176_v55, %v190_v56  ;;  %v392_v1 = vcombine.high %v374_v57, %v388_v61  ;;  %v391_v2 = vcombine.low %v374_v57, %v388_v61  ;;  %v3063_v4 = vld [vmem:[#allocation5 + $0x1b8] sm:$0xff]   ;;  %v3066_v8 = vld [vmem:[#allocation5 + $0x1f0] sm:$0xff]   ;;  %v3070_v12 = vld [vmem:[#allocation5 + $0x1e8] sm:$0xff]  }
  0x3b   :  { %2783 = vmatprep.subr.bf16.mxu1 %v3034_v18  ;;  %v600_v59 = vpack.c.bf16 %v390_v51, %v192_v50  ;;  %v599_v60 = vpack.c.bf16 %v389_v53, %v191_v52  ;;  %v3067_v10 = vld [vmem:[#allocation5 + $0x1b0] sm:$0xff]   ;;  %v3072_v13 = vld [vmem:[#allocation5 + $0x160] sm:$0xff]   ;;  %v3071_v14 = vld [vmem:[#allocation5 + $0x1a8] sm:$0xff]  }
  0x3c   :  { %2762 = vmatpush3.bf16.msra.mxu0 %v3033_v17  ;;  %v602_v5 = vpack.c.bf16 %v392_v1, %v194_v63  ;;  %v601_v6 = vpack.c.bf16 %v391_v2, %v193_v0  ;;  %v3073_v15 = vld [vmem:[#allocation5 + $0x120] sm:$0xff]   ;;  %v3076_v17 = vld [vmem:[#allocation5 + $0x158] sm:$0xff]   ;;  %v3082_v24 = vld [vmem:[#allocation5 + $0x1d0] sm:$0xff]  }
  0x3d   :  { %2763 = vmatprep.subr.bf16.mxu0 %v3036_v20  ;;  %2019 = vmatprep.mubr.bf16.mxu0 %v600_v59  ;;  %v3074_v16 = vld [vmem:[#allocation5 + $0x1e0] sm:$0xff]   ;;  %v3078_v20 = vld [vmem:[#allocation5 + $0x1d8] sm:$0xff]   ;;  %v3084_v25 = vld [vmem:[#allocation5 + $0x148] sm:$0xff]  }
  0x3e   :  { %2784 = vmatpush3.bf16.msra.mxu1 %v3035_v19  ;;  %2060 = vmatprep.mubr.bf16.mxu1 %v602_v5  ;;  %v3075_v18 = vld [vmem:[#allocation5 + $0x1a0] sm:$0xff]   ;;  %v3077_v19 = vld [vmem:[#allocation5 + $0x118] sm:$0xff]   ;;  %v3083_v26 = vld [vmem:[#allocation5 + $0x190] sm:$0xff]  }
  0x3f   :  { %2785 = vmatprep.subr.bf16.mxu1 %v3038_v22  ;;  %v3079_v22 = vld [vmem:[#allocation5 + $0x198] sm:$0xff]   ;;  %v3089_v31 = vld [vmem:[#allocation5 + $0x100] sm:$0xff]   ;;  %v3108_v0 = vld [vmem:[#allocation5 + $0x270] sm:$0xff]  }
  0x40   :  { %2764 = vmatpush3.bf16.msra.mxu0 %v3037_v21  ;;  %v3080_v21 = vld [vmem:[#allocation5 + $0x150] sm:$0xff]   ;;  %v3090_v32 = vld [vmem:[#allocation5 + $0x1c0] sm:$0xff]   ;;  %v3100_v43 = vld [vmem:[#allocation5 + $0x278] sm:$0xff]  }
  0x41   :  { %2765 = vmatprep.subr.bf16.mxu0 %v3040_v27  ;;  %v3085_v27 = vld [vmem:[#allocation5 + $0x108] sm:$0xff]   ;;  %v3097_v37 = vld [vmem:[#allocation2 + $0x110] ss:$44 sps:$4 sm:$0xff]   ;;  %v3099_v41 = vld [vmem:[#allocation5 + $0x180] sm:$0xff]  }
  0x42   :  { %2786 = vmatpush3.bf16.msra.mxu1 %v3039_v23  ;;  %v3081_v23 = vld [vmem:[#allocation5 + $0x110] sm:$0xff]   ;;  %v3101_v44 = vld [vmem:[#allocation2 + $0xc] ss:$44 sps:$4 sm:$0xff]   ;;  %v3103_v48 = vld [vmem:[#allocation2 + $0xbc] ss:$44 sps:$4 sm:$0xff]  }
  0x43   :  { %2787 = vmatprep.subr.bf16.mxu1 %v3042_v29  ;;  %v3087_v29 = vld [vmem:[#allocation5 + $0x188] sm:$0xff]   ;;  %v3102_v45 = vld [vmem:[#allocation2 + $0x64] ss:$44 sps:$4 sm:$0xff]   ;;  %v3104_v49 = vld [vmem:[#allocation2 + $0x114] ss:$44 sps:$4 sm:$0xff]   ;;  %v212_v52 = vrot.slane %v3101_v44, %v3402_v36  ;;  %v410_v54 = vrot.slane %v3103_v48, %v3402_v36 }
  0x44   :  { %2766 = vmatpush3.bf16.msra.mxu0 %v3041_v28  ;;  %v3086_v28 = vld [vmem:[#allocation5 + $0x1c8] sm:$0xff]   ;;  %v226_v53 = vrot.slane %v3102_v45, %v3402_v36  ;;  %v424_v55 = vrot.slane %v3104_v49, %v3402_v36  ;;  %v3106_v56 = vld [vmem:[#allocation5 + $0x2f8] sm:$0xff]   ;;  %v3110_v5 = vld [vmem:[#allocation5 + $0x2f0] sm:$0xff]  }
  0x45   :  { %2767 = vmatprep.subr.bf16.mxu0 %v3044_v33  ;;  %v3091_v33 = vld [vmem:[#allocation2 + $0x8] ss:$44 sps:$4 sm:$0xff]   ;;  %v3105_v59 = vld [vmem:[#allocation5 + $0x238] sm:$0xff]   ;;  %v3147_v45 = vld [vmem:[#allocation2 + $0xc4] ss:$44 sps:$4 sm:$0xff]  }
  0x46   :  { %2788 = vmatpush3.bf16.msra.mxu1 %v3043_v30  ;;  %v3088_v30 = vld [vmem:[#allocation5 + $0x140] sm:$0xff]   ;;  %v205_v38 = vrot.slane %v3091_v33, %v3402_v36  ;;  %v428_v61 = vcombine.high %v410_v54, %v424_v55  ;;  %v427_v63 = vcombine.low %v410_v54, %v424_v55  ;;  %v3107_v1 = vld [vmem:[#allocation5 + $0x2b8] sm:$0xff]  }
  0x47   :  { %2789 = vmatprep.subr.bf16.mxu1 %v3046_v35  ;;  %v3095_v35 = vld [vmem:[#allocation2 + $0xb8] ss:$44 sps:$4 sm:$0xff]  }
  0x48   :  { %2768 = vmatpush3.bf16.msra.mxu0 %v3045_v34  ;;  %v3093_v34 = vld [vmem:[#allocation2 + $0x60] ss:$44 sps:$4 sm:$0xff]   ;;  %v403_v40 = vrot.slane %v3095_v35, %v3402_v36  ;;  %v3141_v33 = vld [vmem:[#allocation2 + $0x118] ss:$44 sps:$4 sm:$0xff]  }
  0x49   :  { %2797 = vmatprep.subr.bf16.mxu0 %v3056_v46  ;;  %v219_v39 = vrot.slane %v3093_v34, %v3402_v36  ;;  %v3146_v44 = vld [vmem:[#allocation2 + $0x6c] ss:$44 sps:$4 sm:$0xff]  }
  0x4a   :  { %2790 = vmatpush3.bf16.msra.mxu1 %v3055_v42  ;;  %v417_v42 = vrot.slane %v3097_v37, %v3402_v36  ;;  %v3143_v37 = vld [vmem:[#allocation5 + $0x280] sm:$0xff]  }
  0x4b   :  { %2819 = vmatprep.subr.bf16.mxu1 %v3062_v62  ;;  %2020 = vmatmul.mubr.bf16.vlgmr.msra.gmra.mxu0 %v599_v60  ;;  %v228_v46 = vcombine.high %v205_v38, %v219_v39  ;;  %v227_v47 = vcombine.low %v205_v38, %v219_v39  ;;  %v230_v60 = vcombine.high %v212_v52, %v226_v53 }
  0x4c   :  { %2798 = vmatpush3.bf16.msra.mxu0 %v3061_v58  ;;  %v426_v50 = vcombine.high %v403_v40, %v417_v42  ;;  %v425_v51 = vcombine.low %v403_v40, %v417_v42  ;;  %v229_v62 = vcombine.low %v212_v52, %v226_v53  ;;  %v453_v39 = vrot.slane %v3141_v33, %v3402_v36  ;;  %v3144_v40 = vld [vmem:[#allocation5 + $0x378] sm:$0xff]  }
  0x4d   :  { %2799 = vmatprep.subr.bf16.mxu0 %v3064_v3  ;;  %2061 = vmatmul.mubr.bf16.vlgmr.msra.gmra.mxu1 %v601_v6  ;;  %v606_v2 = vpack.c.bf16 %v428_v61, %v230_v60  ;;  %v3112_v6 = vld [vmem:[#allocation5 + $0x268] sm:$0xff]   ;;  %v3150_v53 = vld [vmem:[#allocation5 + $0x3f8] sm:$0xff]   ;;  %v3152_v61 = vld [vmem:[#allocation5 + $0x370] sm:$0xff]  }
  0x4e   :  { %2820 = vmatpush3.bf16.msra.mxu1 %v3063_v4  ;;  %v604_v57 = vpack.c.bf16 %v426_v50, %v228_v46  ;;  %v603_v58 = vpack.c.bf16 %v425_v51, %v227_v47  ;;  %v605_v3 = vpack.c.bf16 %v427_v63, %v229_v62  ;;  %v3109_v4 = vld [vmem:[#allocation5 + $0x230] sm:$0xff]   ;;  %v3148_v46 = vld [vmem:[#allocation2 + $0x11c] ss:$44 sps:$4 sm:$0xff]   ;;  %v262_v50 = vrot.slane %v3146_v44, %v3402_v36 }
  0x4f   :  { %2821 = vmatprep.subr.bf16.mxu1 %v3066_v8  ;;  %2142 = vmatprep.mubr.bf16.mxu1 %v606_v2  ;;  %v3113_v8 = vld [vmem:[#allocation5 + $0x228] sm:$0xff]   ;;  %v446_v51 = vrot.slane %v3147_v45, %v3402_v36  ;;  %v460_v52 = vrot.slane %v3148_v46, %v3402_v36  ;;  %v3151_v62 = vld [vmem:[#allocation5 + $0x3b8] sm:$0xff]   ;;  %v3154_v2 = vld [vmem:[#allocation5 + $0x3f0] sm:$0xff]  }
  0x50   :  { %2800 = vmatpush3.bf16.msra.mxu0 %v3065_v7  ;;  %2101 = vmatprep.mubr.bf16.mxu0 %v604_v57  ;;  %v3111_v7 = vld [vmem:[#allocation5 + $0x2b0] sm:$0xff]  }
  0x51   :  { %2801 = vmatprep.subr.bf16.mxu0 %v3068_v9  ;;  %v3114_v9 = vld [vmem:[#allocation5 + $0x2e8] sm:$0xff]   ;;  %v463_v60 = vcombine.low %v446_v51, %v460_v52  ;;  %v3192_v45 = vld [vmem:[#allocation2 + $0x124] ss:$44 sps:$4 sm:$0xff]  }
  0x52   :  { %2822 = vmatpush3.bf16.msra.mxu1 %v3067_v10  ;;  %v3116_v10 = vld [vmem:[#allocation5 + $0x260] sm:$0xff]  }
  0x53   :  { %2823 = vmatprep.subr.bf16.mxu1 %v3070_v12  ;;  %v3117_v12 = vld [vmem:[#allocation5 + $0x220] sm:$0xff]  }
  0x54   :  { %2802 = vmatpush3.bf16.msra.mxu0 %v3069_v11  ;;  %v3115_v11 = vld [vmem:[#allocation5 + $0x2a8] sm:$0xff]  }
  0x55   :  { %2803 = vmatprep.subr.bf16.mxu0 %v3072_v13  ;;  %v3118_v13 = vld [vmem:[#allocation5 + $0x2e0] sm:$0xff]  }
  0x56   :  { %2824 = vmatpush3.bf16.msra.mxu1 %v3071_v14  ;;  %v3120_v14 = vld [vmem:[#allocation5 + $0x258] sm:$0xff]  }
  0x57   :  { %2825 = vmatprep.subr.bf16.mxu1 %v3074_v16  ;;  %v3121_v16 = vld [vmem:[#allocation5 + $0x218] sm:$0xff]  }
  0x58   :  { %2804 = vmatpush3.bf16.msra.mxu0 %v3073_v15  ;;  %v3119_v15 = vld [vmem:[#allocation5 + $0x2a0] sm:$0xff]  }
  0x59   :  { %2805 = vmatprep.subr.bf16.mxu0 %v3076_v17  ;;  %v3122_v17 = vld [vmem:[#allocation5 + $0x2d8] sm:$0xff]  }
  0x5a   :  { %2826 = vmatpush3.bf16.msra.mxu1 %v3075_v18  ;;  %v3124_v18 = vld [vmem:[#allocation5 + $0x250] sm:$0xff]  }
  0x5b   :  { %2827 = vmatprep.subr.bf16.mxu1 %v3078_v20  ;;  %v3125_v20 = vld [vmem:[#allocation5 + $0x210] sm:$0xff]  }
  0x5c   :  { %2806 = vmatpush3.bf16.msra.mxu0 %v3077_v19  ;;  %v3123_v19 = vld [vmem:[#allocation5 + $0x298] sm:$0xff]  }
  0x5d   :  { %2807 = vmatprep.subr.bf16.mxu0 %v3080_v21  ;;  %v3126_v21 = vld [vmem:[#allocation5 + $0x2d0] sm:$0xff]  }
  0x5e   :  { %2828 = vmatpush3.bf16.msra.mxu1 %v3079_v22  ;;  %v3128_v22 = vld [vmem:[#allocation5 + $0x248] sm:$0xff]  }
  0x5f   :  { %2829 = vmatprep.subr.bf16.mxu1 %v3082_v24  ;;  %v3129_v24 = vld [vmem:[#allocation5 + $0x208] sm:$0xff]  }
  0x60   :  { %2808 = vmatpush3.bf16.msra.mxu0 %v3081_v23  ;;  %v3127_v23 = vld [vmem:[#allocation5 + $0x290] sm:$0xff]  }
  0x61   :  { %2809 = vmatprep.subr.bf16.mxu0 %v3084_v25  ;;  %v3130_v25 = vld [vmem:[#allocation5 + $0x2c8] sm:$0xff]  }
  0x62   :  { %2830 = vmatpush3.bf16.msra.mxu1 %v3083_v26  ;;  %v3131_v26 = vld [vmem:[#allocation5 + $0x288] sm:$0xff]  }
  0x63   :  { %2831 = vmatprep.subr.bf16.mxu1 %v3086_v28  ;;  %v3133_v28 = vld [vmem:[#allocation5 + $0x200] sm:$0xff]  }
  0x64   :  { %2810 = vmatpush3.bf16.msra.mxu0 %v3085_v27  ;;  %v3132_v27 = vld [vmem:[#allocation5 + $0x240] sm:$0xff]  }
  0x65   :  { %2811 = vmatprep.subr.bf16.mxu0 %v3088_v30  ;;  %v3135_v30 = vld [vmem:[#allocation2 + $0x10] ss:$44 sps:$4 sm:$0xff]  }
  0x66   :  { %2832 = vmatpush3.bf16.msra.mxu1 %v3087_v29  ;;  %v3134_v29 = vld [vmem:[#allocation5 + $0x2c0] sm:$0xff]   ;;  %v241_v34 = vrot.slane %v3135_v30, %v3402_v36 }
  0x67   :  { %2833 = vmatprep.subr.bf16.mxu1 %v3090_v32  ;;  %v3139_v32 = vld [vmem:[#allocation2 + $0xc0] ss:$44 sps:$4 sm:$0xff]  }
  0x68   :  { %2812 = vmatpush3.bf16.msra.mxu0 %v3089_v31  ;;  %v3137_v31 = vld [vmem:[#allocation2 + $0x68] ss:$44 sps:$4 sm:$0xff]   ;;  %v439_v38 = vrot.slane %v3139_v32, %v3402_v36  ;;  %v3185_v30 = vld [vmem:[#allocation2 + $0x120] ss:$44 sps:$4 sm:$0xff]  }
  0x69   :  { %2841 = vmatprep.subr.bf16.mxu0 %v3100_v43  ;;  %v255_v35 = vrot.slane %v3137_v31, %v3402_v36  ;;  %v3187_v32 = vld [vmem:[#allocation5 + $0x380] sm:$0xff]  }
  0x6a   :  { %2834 = vmatpush3.bf16.msra.mxu1 %v3099_v41  ;;  %v3145_v41 = vld [vmem:[#allocation2 + $0x14] ss:$44 sps:$4 sm:$0xff]   ;;  %v462_v47 = vcombine.high %v439_v38, %v453_v39  ;;  %v461_v48 = vcombine.low %v439_v38, %v453_v39  ;;  %v3189_v38 = vld [vmem:[#allocation2 + $0x1c] ss:$44 sps:$4 sm:$0xff]  }
  0x6b   :  { %2863 = vmatprep.subr.bf16.mxu1 %v3106_v56  ;;  %2102 = vmatmul.mubr.bf16.vlgmr.msra.gmra.mxu0 %v603_v58  ;;  %v264_v42 = vcombine.high %v241_v34, %v255_v35  ;;  %v263_v43 = vcombine.low %v241_v34, %v255_v35  ;;  %v248_v49 = vrot.slane %v3145_v41, %v3402_v36  ;;  %v3149_v56 = vld [vmem:[#allocation5 + $0x338] sm:$0xff]   ;;  %v3190_v39 = vld [vmem:[#allocation2 + $0x74] ss:$44 sps:$4 sm:$0xff]  }
  0x6c   :  { %2842 = vmatpush3.bf16.msra.mxu0 %v3105_v59  ;;  %v464_v58 = vcombine.high %v446_v51, %v460_v52  ;;  %v489_v35 = vrot.slane %v3185_v30, %v3402_v36  ;;  %v284_v46 = vrot.slane %v3189_v38, %v3402_v36  ;;  %v496_v52 = vrot.slane %v3192_v45, %v3402_v36  ;;  %v3235_v38 = vld [vmem:[#allocation2 + $0x12c] ss:$44 sps:$4 sm:$0xff]  }
  0x6d   :  { %2843 = vmatprep.subr.bf16.mxu0 %v3108_v0  ;;  %2143 = vmatmul.mubr.bf16.vlgmr.msra.gmra.mxu1 %v605_v3  ;;  %v608_v54 = vpack.c.bf16 %v462_v47, %v264_v42  ;;  %v607_v55 = vpack.c.bf16 %v461_v48, %v263_v43  ;;  %v266_v57 = vcombine.high %v248_v49, %v262_v50  ;;  %v3156_v3 = vld [vmem:[#allocation5 + $0x368] sm:$0xff]  }
  0x6e   :  { %2864 = vmatpush3.bf16.msra.mxu1 %v3107_v1  ;;  %v265_v59 = vcombine.low %v248_v49, %v262_v50  ;;  %v3153_v1 = vld [vmem:[#allocation5 + $0x330] sm:$0xff]   ;;  %v298_v47 = vrot.slane %v3190_v39, %v3402_v36  ;;  %v3193_v49 = vld [vmem:[#allocation5 + $0x438] sm:$0xff]  }
  0x6f   :  { %2865 = vmatprep.subr.bf16.mxu1 %v3110_v5  ;;  %2183 = vmatprep.mubr.bf16.mxu0 %v608_v54  ;;  %v610_v63 = vpack.c.bf16 %v464_v58, %v266_v57  ;;  %v3157_v5 = vld [vmem:[#allocation5 + $0x328] sm:$0xff]   ;;  %v3196_v58 = vld [vmem:[#allocation5 + $0x470] sm:$0xff]  }
  0x70   :  { %2844 = vmatpush3.bf16.msra.mxu0 %v3109_v4  ;;  %v609_v0 = vpack.c.bf16 %v463_v60, %v265_v59  ;;  %v3155_v4 = vld [vmem:[#allocation5 + $0x3b0] sm:$0xff]   ;;  %v302_v54 = vcombine.high %v284_v46, %v298_v47  ;;  %v3195_v59 = vld [vmem:[#allocation5 + $0x4b8] sm:$0xff]  }
  0x71   :  { %2845 = vmatprep.subr.bf16.mxu0 %v3112_v6  ;;  %2224 = vmatprep.mubr.bf16.mxu1 %v610_v63  ;;  %v3158_v6 = vld [vmem:[#allocation5 + $0x3e8] sm:$0xff]   ;;  %v3198_v63 = vld [vmem:[#allocation5 + $0x4f0] sm:$0xff]  }
  0x72   :  { %2866 = vmatpush3.bf16.msra.mxu1 %v3111_v7  ;;  %v3160_v7 = vld [vmem:[#allocation5 + $0x360] sm:$0xff]  }
  0x73   :  { %2867 = vmatprep.subr.bf16.mxu1 %v3114_v9  ;;  %v3161_v9 = vld [vmem:[#allocation5 + $0x320] sm:$0xff]  }
  0x74   :  { %2846 = vmatpush3.bf16.msra.mxu0 %v3113_v8  ;;  %v3159_v8 = vld [vmem:[#allocation5 + $0x3a8] sm:$0xff]  }
  0x75   :  { %2847 = vmatprep.subr.bf16.mxu0 %v3116_v10  ;;  %v3162_v10 = vld [vmem:[#allocation5 + $0x3e0] sm:$0xff]  }
  0x76   :  { %2868 = vmatpush3.bf16.msra.mxu1 %v3115_v11  ;;  %v3164_v11 = vld [vmem:[#allocation5 + $0x358] sm:$0xff]  }
  0x77   :  { %2869 = vmatprep.subr.bf16.mxu1 %v3118_v13  ;;  %v3165_v13 = vld [vmem:[#allocation5 + $0x318] sm:$0xff]  }
  0x78   :  { %2848 = vmatpush3.bf16.msra.mxu0 %v3117_v12  ;;  %v3163_v12 = vld [vmem:[#allocation5 + $0x3a0] sm:$0xff]  }
  0x79   :  { %2849 = vmatprep.subr.bf16.mxu0 %v3120_v14  ;;  %v3166_v14 = vld [vmem:[#allocation5 + $0x3d8] sm:$0xff]  }
  0x7a   :  { %2870 = vmatpush3.bf16.msra.mxu1 %v3119_v15  ;;  %v3168_v15 = vld [vmem:[#allocation5 + $0x350] sm:$0xff]  }
  0x7b   :  { %2871 = vmatprep.subr.bf16.mxu1 %v3122_v17  ;;  %v3169_v17 = vld [vmem:[#allocation5 + $0x310] sm:$0xff]  }
  0x7c   :  { %2850 = vmatpush3.bf16.msra.mxu0 %v3121_v16  ;;  %v3167_v16 = vld [vmem:[#allocation5 + $0x398] sm:$0xff]  }
  0x7d   :  { %2851 = vmatprep.subr.bf16.mxu0 %v3124_v18  ;;  %v3170_v18 = vld [vmem:[#allocation5 + $0x3d0] sm:$0xff]  }
  0x7e   :  { %2872 = vmatpush3.bf16.msra.mxu1 %v3123_v19  ;;  %v3172_v19 = vld [vmem:[#allocation5 + $0x348] sm:$0xff]  }
  0x7f   :  { %2873 = vmatprep.subr.bf16.mxu1 %v3126_v21  ;;  %v3173_v21 = vld [vmem:[#allocation5 + $0x308] sm:$0xff]  }
  0x80   :  { %2852 = vmatpush3.bf16.msra.mxu0 %v3125_v20  ;;  %v3171_v20 = vld [vmem:[#allocation5 + $0x390] sm:$0xff]  }
  0x81   :  { %2853 = vmatprep.subr.bf16.mxu0 %v3128_v22  ;;  %v3174_v22 = vld [vmem:[#allocation5 + $0x3c8] sm:$0xff]  }
  0x82   :  { %2874 = vmatpush3.bf16.msra.mxu1 %v3127_v23  ;;  %v3175_v23 = vld [vmem:[#allocation5 + $0x388] sm:$0xff]  }
  0x83   :  { %2875 = vmatprep.subr.bf16.mxu1 %v3130_v25  ;;  %v3177_v25 = vld [vmem:[#allocation5 + $0x300] sm:$0xff]  }
  0x84   :  { %2854 = vmatpush3.bf16.msra.mxu0 %v3129_v24  ;;  %v3176_v24 = vld [vmem:[#allocation5 + $0x340] sm:$0xff]  }
  0x85   :  { %2855 = vmatprep.subr.bf16.mxu0 %v3132_v27  ;;  %v3179_v27 = vld [vmem:[#allocation2 + $0x18] ss:$44 sps:$4 sm:$0xff]  }
  0x86   :  { %2876 = vmatpush3.bf16.msra.mxu1 %v3131_v26  ;;  %v3178_v26 = vld [vmem:[#allocation5 + $0x3c0] sm:$0xff]   ;;  %v277_v31 = vrot.slane %v3179_v27, %v3402_v36  ;;  %v3229_v27 = vld [vmem:[#allocation2 + $0x128] ss:$44 sps:$4 sm:$0xff]  }
  0x87   :  { %2877 = vmatprep.subr.bf16.mxu1 %v3134_v29  ;;  %v3183_v29 = vld [vmem:[#allocation2 + $0xc8] ss:$44 sps:$4 sm:$0xff]  }
  0x88   :  { %2856 = vmatpush3.bf16.msra.mxu0 %v3133_v28  ;;  %v3181_v28 = vld [vmem:[#allocation2 + $0x70] ss:$44 sps:$4 sm:$0xff]   ;;  %v475_v34 = vrot.slane %v3183_v29, %v3402_v36 }
  0x89   :  { %2885 = vmatprep.subr.bf16.mxu0 %v3144_v40  ;;  %v291_v33 = vrot.slane %v3181_v28, %v3402_v36  ;;  %v3191_v40 = vld [vmem:[#allocation2 + $0xcc] ss:$44 sps:$4 sm:$0xff]  }
  0x8a   :  { %2878 = vmatpush3.bf16.msra.mxu1 %v3143_v37  ;;  %v3188_v37 = vld [vmem:[#allocation5 + $0x478] sm:$0xff]   ;;  %v498_v42 = vcombine.high %v475_v34, %v489_v35  ;;  %v497_v44 = vcombine.low %v475_v34, %v489_v35  ;;  %v482_v48 = vrot.slane %v3191_v40, %v3402_v36  ;;  %v525_v35 = vrot.slane %v3229_v27, %v3402_v36 }
  0x8b   :  { %2907 = vmatprep.subr.bf16.mxu1 %v3150_v53  ;;  %2184 = vmatmul.mubr.bf16.vlgmr.msra.gmra.mxu0 %v607_v55  ;;  %v300_v41 = vcombine.high %v277_v31, %v291_v33  ;;  %v299_v43 = vcombine.low %v277_v31, %v291_v33  ;;  %v3194_v53 = vld [vmem:[#allocation5 + $0x4f8] sm:$0xff]   ;;  %v301_v55 = vcombine.low %v284_v46, %v298_v47  ;;  %v3231_v31 = vld [vmem:[#allocation5 + $0x480] sm:$0xff]  }
  0x8c   :  { %2886 = vmatpush3.bf16.msra.mxu0 %v3149_v56  ;;  %v500_v56 = vcombine.high %v482_v48, %v496_v52  ;;  %v499_v57 = vcombine.low %v482_v48, %v496_v52  ;;  %v3232_v33 = vld [vmem:[#allocation2 + $0x24] ss:$44 sps:$4 sm:$0xff]   ;;  %v3233_v34 = vld [vmem:[#allocation2 + $0x7c] ss:$44 sps:$4 sm:$0xff]   ;;  %v532_v46 = vrot.slane %v3235_v38, %v3402_v36 }
  0x8d   :  { %2887 = vmatprep.subr.bf16.mxu0 %v3152_v61  ;;  %2225 = vmatmul.mubr.bf16.vlgmr.msra.gmra.mxu1 %v609_v0  ;;  %v612_v50 = vpack.c.bf16 %v498_v42, %v300_v41  ;;  %v611_v51 = vpack.c.bf16 %v497_v44, %v299_v43  ;;  %v3200_v0 = vld [vmem:[#allocation5 + $0x468] sm:$0xff]   ;;  %v320_v41 = vrot.slane %v3232_v33, %v3402_v36  ;;  %v3236_v52 = vld [vmem:[#allocation5 + $0x538] sm:$0xff]  }
  0x8e   :  { %2908 = vmatpush3.bf16.msra.mxu1 %v3151_v62  ;;  %v614_v60 = vpack.c.bf16 %v500_v56, %v302_v54  ;;  %v613_v61 = vpack.c.bf16 %v499_v57, %v301_v55  ;;  %v3197_v62 = vld [vmem:[#allocation5 + $0x430] sm:$0xff]   ;;  %v334_v42 = vrot.slane %v3233_v34, %v3402_v36  ;;  %v3238_v57 = vld [vmem:[#allocation5 + $0x528] sm:$0xff]  }
  0x8f   :  { %2909 = vmatprep.subr.bf16.mxu1 %v3154_v2  ;;  %2265 = vmatprep.mubr.bf16.mxu0 %v612_v50  ;;  %v3201_v2 = vld [vmem:[#allocation5 + $0x428] sm:$0xff]   ;;  %v3237_v56 = vld [vmem:[#allocation5 + $0x530] sm:$0xff]  }
  0x90   :  { %2888 = vmatpush3.bf16.msra.mxu0 %v3153_v1  ;;  %2306 = vmatprep.mubr.bf16.mxu1 %v614_v60  ;;  %v3199_v1 = vld [vmem:[#allocation5 + $0x4b0] sm:$0xff]   ;;  %v338_v47 = vcombine.high %v320_v41, %v334_v42  ;;  %v337_v48 = vcombine.low %v320_v41, %v334_v42  ;;  %v3247_v60 = vld [vmem:[#allocation2 + $0xd8] ss:$44 sps:$4 sm:$0xff]  }
  0x91   :  { %2889 = vmatprep.subr.bf16.mxu0 %v3156_v3  ;;  %v3202_v3 = vld [vmem:[#allocation5 + $0x4e8] sm:$0xff]  }
  0x92   :  { %2910 = vmatpush3.bf16.msra.mxu1 %v3155_v4  ;;  %v3204_v4 = vld [vmem:[#allocation5 + $0x460] sm:$0xff]  }
  0x93   :  { %2911 = vmatprep.subr.bf16.mxu1 %v3158_v6  ;;  %v3205_v6 = vld [vmem:[#allocation5 + $0x420] sm:$0xff]  }
  0x94   :  { %2890 = vmatpush3.bf16.msra.mxu0 %v3157_v5  ;;  %v3203_v5 = vld [vmem:[#allocation5 + $0x4a8] sm:$0xff]  }
  0x95   :  { %2891 = vmatprep.subr.bf16.mxu0 %v3160_v7  ;;  %v3206_v7 = vld [vmem:[#allocation5 + $0x4e0] sm:$0xff]  }
  0x96   :  { %2912 = vmatpush3.bf16.msra.mxu1 %v3159_v8  ;;  %v3208_v8 = vld [vmem:[#allocation5 + $0x458] sm:$0xff]  }
  0x97   :  { %2913 = vmatprep.subr.bf16.mxu1 %v3162_v10  ;;  %v3209_v10 = vld [vmem:[#allocation5 + $0x418] sm:$0xff]  }
  0x98   :  { %2892 = vmatpush3.bf16.msra.mxu0 %v3161_v9  ;;  %v3207_v9 = vld [vmem:[#allocation5 + $0x4a0] sm:$0xff]  }
  0x99   :  { %2893 = vmatprep.subr.bf16.mxu0 %v3164_v11  ;;  %v3210_v11 = vld [vmem:[#allocation5 + $0x4d8] sm:$0xff]  }
  0x9a   :  { %2914 = vmatpush3.bf16.msra.mxu1 %v3163_v12  ;;  %v3212_v12 = vld [vmem:[#allocation5 + $0x450] sm:$0xff]  }
  0x9b   :  { %2915 = vmatprep.subr.bf16.mxu1 %v3166_v14  ;;  %v3213_v14 = vld [vmem:[#allocation5 + $0x410] sm:$0xff]  }
  0x9c   :  { %2894 = vmatpush3.bf16.msra.mxu0 %v3165_v13  ;;  %v3211_v13 = vld [vmem:[#allocation5 + $0x498] sm:$0xff]  }
  0x9d   :  { %2895 = vmatprep.subr.bf16.mxu0 %v3168_v15  ;;  %v3214_v15 = vld [vmem:[#allocation5 + $0x4d0] sm:$0xff]  }
  0x9e   :  { %2916 = vmatpush3.bf16.msra.mxu1 %v3167_v16  ;;  %v3216_v16 = vld [vmem:[#allocation5 + $0x448] sm:$0xff]  }
  0x9f   :  { %2917 = vmatprep.subr.bf16.mxu1 %v3170_v18  ;;  %v3217_v18 = vld [vmem:[#allocation5 + $0x408] sm:$0xff]  }
  0xa0   :  { %2896 = vmatpush3.bf16.msra.mxu0 %v3169_v17  ;;  %v3215_v17 = vld [vmem:[#allocation5 + $0x490] sm:$0xff]  }
  0xa1   :  { %2897 = vmatprep.subr.bf16.mxu0 %v3172_v19  ;;  %v3218_v19 = vld [vmem:[#allocation5 + $0x4c8] sm:$0xff]  }
  0xa2   :  { %2918 = vmatpush3.bf16.msra.mxu1 %v3171_v20  ;;  %v3219_v20 = vld [vmem:[#allocation5 + $0x488] sm:$0xff]  }
  0xa3   :  { %2919 = vmatprep.subr.bf16.mxu1 %v3174_v22  ;;  %v3221_v22 = vld [vmem:[#allocation5 + $0x400] sm:$0xff]  }
  0xa4   :  { %2898 = vmatpush3.bf16.msra.mxu0 %v3173_v21  ;;  %v3220_v21 = vld [vmem:[#allocation5 + $0x440] sm:$0xff]  }
  0xa5   :  { %2899 = vmatprep.subr.bf16.mxu0 %v3176_v24  ;;  %v3223_v24 = vld [vmem:[#allocation2 + $0x20] ss:$44 sps:$4 sm:$0xff]  }
  0xa6   :  { %2920 = vmatpush3.bf16.msra.mxu1 %v3175_v23  ;;  %v3222_v23 = vld [vmem:[#allocation5 + $0x4c0] sm:$0xff]   ;;  %v313_v28 = vrot.slane %v3223_v24, %v3402_v36 }
  0xa7   :  { %2921 = vmatprep.subr.bf16.mxu1 %v3178_v26  ;;  %v3227_v26 = vld [vmem:[#allocation2 + $0xd0] ss:$44 sps:$4 sm:$0xff]  }
  0xa8   :  { %2900 = vmatpush3.bf16.msra.mxu0 %v3177_v25  ;;  %v3225_v25 = vld [vmem:[#allocation2 + $0x78] ss:$44 sps:$4 sm:$0xff]   ;;  %v511_v30 = vrot.slane %v3227_v26, %v3402_v36 }
  0xa9   :  { %2929 = vmatprep.subr.bf16.mxu0 %v3188_v37  ;;  %v327_v29 = vrot.slane %v3225_v25, %v3402_v36  ;;  %v3234_v37 = vld [vmem:[#allocation2 + $0xd4] ss:$44 sps:$4 sm:$0xff]  }
  0xaa   :  { %2922 = vmatpush3.bf16.msra.mxu1 %v3187_v32  ;;  %v3351_v32 = vmov 0   ;;  %v534_v43 = vcombine.high %v511_v30, %v525_v35  ;;  %v533_v44 = vcombine.low %v511_v30, %v525_v35  ;;  %v518_v45 = vrot.slane %v3234_v37, %v3402_v36 }
  0xab   :  { %2951 = vmatprep.subr.bf16.mxu1 %v3194_v53  ;;  %2266 = vmatmul.mubr.bf16.vlgmr.msra.gmra.mxu0 %v611_v51  ;;  %v336_v39 = vcombine.high %v313_v28, %v327_v29  ;;  %v335_v40 = vcombine.low %v313_v28, %v327_v29 }
  0xac   :  { %2930 = vmatpush3.bf16.msra.mxu0 %v3193_v49  ;;  %v536_v51 = vcombine.high %v518_v45, %v532_v46  ;;  %v535_v53 = vcombine.low %v518_v45, %v532_v46 }
  0xad   :  { %2931 = vmatprep.subr.bf16.mxu0 %v3196_v58  ;;  %2307 = vmatmul.mubr.bf16.vlgmr.msra.gmra.mxu1 %v613_v61  ;;  %v616_v49 = vpack.c.bf16 %v534_v43, %v336_v39  ;;  %v615_v50 = vpack.c.bf16 %v533_v44, %v335_v40  ;;  %v3245_v58 = vld [vmem:[#allocation2 + $0x28] ss:$44 sps:$4 sm:$0xff]   ;;  %v3248_v61 = vld [vmem:[#allocation2 + $0x130] ss:$44 sps:$4 sm:$0xff]  }
  0xae   :  { %2952 = vmatpush3.bf16.msra.mxu1 %v3195_v59  ;;  %v618_v54 = vpack.c.bf16 %v536_v51, %v338_v47  ;;  %v617_v55 = vpack.c.bf16 %v535_v53, %v337_v48  ;;  %v3246_v59 = vld [vmem:[#allocation2 + $0x80] ss:$44 sps:$4 sm:$0xff]  }
  0xaf   :  { %2953 = vmatprep.subr.bf16.mxu1 %v3198_v63  ;;  %2347 = vmatprep.mubr.bf16.mxu0 %v616_v49  ;;  %v347_v63 = vrot.slane %v3245_v58, %v3402_v36 }
  0xb0   :  { %2932 = vmatpush3.bf16.msra.mxu0 %v3197_v62  ;;  %2388 = vmatprep.mubr.bf16.mxu1 %v618_v54  ;;  %v3239_v62 = vld [vmem:[#allocation5 + $0x520] sm:$0xff]  }
  0xb1   :  { %2933 = vmatprep.subr.bf16.mxu0 %v3200_v0  ;;  %v354_v0 = vrot.slane %v3246_v59, %v3402_v36 }
  0xb2   :  { %2954 = vmatpush3.bf16.msra.mxu1 %v3199_v1  ;;  %v545_v1 = vrot.slane %v3247_v60, %v3402_v36 }
  0xb3   :  { %2955 = vmatprep.subr.bf16.mxu1 %v3202_v3  ;;  %v356_v3 = vcombine.high %v347_v63, %v354_v0 }
  0xb4   :  { %2934 = vmatpush3.bf16.msra.mxu0 %v3201_v2  ;;  %v552_v2 = vrot.slane %v3248_v61, %v3402_v36  ;;  %v3243_v36 = vld [vmem:[#allocation5 + $0x500] sm:$0xff]  }
  0xb5   :  { %2935 = vmatprep.subr.bf16.mxu0 %v3204_v4 }
  0xb6   :  { %2956 = vmatpush3.bf16.msra.mxu1 %v3203_v5  ;;  %v554_v4 = vcombine.high %v545_v1, %v552_v2 }
  0xb7   :  { %2957 = vmatprep.subr.bf16.mxu1 %v3206_v7  ;;  %v3241_v7 = vld [vmem:[#allocation5 + $0x510] sm:$0xff]  }
  0xb8   :  { %2936 = vmatpush3.bf16.msra.mxu0 %v3205_v6  ;;  %v620_v5 = vpack.c.bf16 %v554_v4, %v356_v3  ;;  %v3240_v6 = vld [vmem:[#allocation5 + $0x518] sm:$0xff]  }
  0xb9   :  { %2937 = vmatprep.subr.bf16.mxu0 %v3208_v8  ;;  %v3242_v8 = vld [vmem:[#allocation5 + $0x508] sm:$0xff]  }
  0xba   :  { %2958 = vmatpush3.bf16.msra.mxu1 %v3207_v9  ;;  %v3244_v9 = vld [vmem:[#allocation5 + $0x540] sm:$0x3f]  }
  0xbb   :  { %2959 = vmatprep.subr.bf16.mxu1 %v3210_v11  ;;  %v553_v11 = vcombine.low %v545_v1, %v552_v2 }
  0xbc   :  { %2938 = vmatpush3.bf16.msra.mxu0 %v3209_v10  ;;  %v355_v10 = vcombine.low %v347_v63, %v354_v0 }
  0xbd   :  { %2939 = vmatprep.subr.bf16.mxu0 %v3212_v12  ;;  %v1985_v12 = vsel %vm1983_vm1, %v3244_v9, 0 }
  0xbe   :  { %2960 = vmatpush3.bf16.msra.mxu1 %v3211_v13  ;;  %v619_v13 = vpack.c.bf16 %v553_v11, %v355_v10 }
  0xbf   :  { %2961 = vmatprep.subr.bf16.mxu1 %v3214_v15  ;;  %v3352_v15 = vmov 0.0  }
  0xc0   :  { %2940 = vmatpush3.bf16.msra.mxu0 %v3213_v14  ;;  %v3249_v14 = vld [vmem:[#allocation7 + $0x38] sm:$0xff]  }
  0xc1   :  { %2941 = vmatprep.subr.bf16.mxu0 %v3216_v16  ;;  %v3250_v16 = vld [vmem:[#allocation7 + $0x30] sm:$0xff]  }
  0xc2   :  { %2962 = vmatpush3.bf16.msra.mxu1 %v3215_v17  ;;  %v3251_v17 = vld [vmem:[#allocation7 + $0x28] sm:$0xff]  }
  0xc3   :  { %2963 = vmatprep.subr.bf16.mxu1 %v3218_v19  ;;  %v3253_v19 = vld [vmem:[#allocation7 + $0x18] sm:$0xff]  }
  0xc4   :  { %2942 = vmatpush3.bf16.msra.mxu0 %v3217_v18  ;;  %v3252_v18 = vld [vmem:[#allocation7 + $0x20] sm:$0xff]  }
  0xc5   :  { %2943 = vmatprep.subr.bf16.mxu0 %v3220_v21  ;;  %v3255_v21 = vld [vmem:[#allocation7 + $0x8] sm:$0xff]  }
  0xc6   :  { %2964 = vmatpush3.bf16.msra.mxu1 %v3219_v20  ;;  %v3254_v20 = vld [vmem:[#allocation7 + $0x10] sm:$0xff]  }
  0xc7   :  { %2965 = vmatprep.subr.bf16.mxu1 %v3222_v23 }
  0xc8   :  { %2944 = vmatpush3.bf16.msra.mxu0 %v3221_v22  ;;  %v3256_v22 = vld [vmem:[#allocation7] sm:$0xff]  }
  0xc9   :  { %2397 = vmatprep.subr.bf16.mxu0 %v3351_v32 }
  0xca   :  { %2966 = vmatpush3.bf16.msra.mxu1 %v3231_v31 }
  0xcb   :  { %2348 = vmatmul.mubr.bf16.vlgmr.msra.gmra.mxu0 %v615_v50  ;;  %2982 = vmatprep.subr.bf16.mxu1 %v3352_v15  ;;  %v2573_v50 = vld [vmem:[%s3468_s2] ss:$0 sm:$0xff] }
  0xcc   :  { %2398 = vmatpush1.bf16.msra.mxu0 %v3236_v52  ;;  %2743 = vmatprep.mubr.msk.bf16.mxu0 %vm1979_vm0, %v620_v5 }
  0xcd   :  { %2389 = vmatmul.mubr.bf16.vlgmr.msra.gmra.mxu1 %v617_v55  ;;  %2399 = vmatprep.subr.bf16.mxu0 %v3351_v32 }
  0xce   :  { %2983 = vmatpush3.bf16.msra.mxu1 %v3249_v14  ;;  %2998 = vmatprep.mubr.msk.bf16.mxu1 %vm3353_vm2, %v3352_v15 }
  0xcf   :  { %2984 = vmatprep.subr.bf16.mxu1 %v3352_v15 }
  0xd0   :  { %2400 = vmatpush1.bf16.msra.mxu0 %v3237_v56 }
  0xd1   :  { %2401 = vmatprep.subr.bf16.mxu0 %v3351_v32 }
  0xd2   :  { %2985 = vmatpush3.bf16.msra.mxu1 %v3250_v16 }
  0xd3   :  { %2986 = vmatprep.subr.bf16.mxu1 %v3352_v15 }
  0xd4   :  { %2402 = vmatpush1.bf16.msra.mxu0 %v3238_v57 }
  0xd5   :  { %2403 = vmatprep.subr.bf16.mxu0 %v3351_v32 }
  0xd6   :  { %2987 = vmatpush3.bf16.msra.mxu1 %v3251_v17 }
  0xd7   :  { %2988 = vmatprep.subr.bf16.mxu1 %v3352_v15 }
  0xd8   :  { %2404 = vmatpush1.bf16.msra.mxu0 %v3239_v62 }
  0xd9   :  { %2405 = vmatprep.subr.bf16.mxu0 %v3351_v32 }
  0xda   :  { %2989 = vmatpush3.bf16.msra.mxu1 %v3252_v18 }
  0xdb   :  { %2990 = vmatprep.subr.bf16.mxu1 %v3352_v15 }
  0xdc   :  { %2406 = vmatpush1.bf16.msra.mxu0 %v3240_v6 }
  0xdd   :  { %2407 = vmatprep.subr.bf16.mxu0 %v3351_v32 }
  0xde   :  { %2991 = vmatpush3.bf16.msra.mxu1 %v3253_v19 }
  0xdf   :  { %2992 = vmatprep.subr.bf16.mxu1 %v3352_v15 }
  0xe0   :  { %2408 = vmatpush1.bf16.msra.mxu0 %v3241_v7 }
  0xe1   :  { %2409 = vmatprep.subr.bf16.mxu0 %v3351_v32 }
  0xe2   :  { %2993 = vmatpush3.bf16.msra.mxu1 %v3254_v20 }
  0xe3   :  { %2994 = vmatprep.subr.bf16.mxu1 %v3352_v15 }
  0xe4   :  { %2410 = vmatpush1.bf16.msra.mxu0 %v3242_v8 }
  0xe5   :  { %2411 = vmatprep.subr.bf16.mxu0 %v3351_v32 }
  0xe6   :  { %2995 = vmatpush3.bf16.msra.mxu1 %v3255_v21 }
  0xe7   :  { %2996 = vmatprep.subr.bf16.mxu1 %v3352_v15 }
  0xe8   :  { %2412 = vmatpush1.bf16.msra.mxu0 %v3243_v36 }
  0xe9   :  { %2427 = vmatprep.subr.bf16.mxu0 %v3351_v32 }
  0xea   :  { %2997 = vmatpush3.bf16.msra.mxu1 %v3256_v22 }
  0xec   :  { %2428 = vmatpush2.bf16.msra.mxu0 %v1985_v12 }
  0xef   :  { %2430 = vmatmul.mubr.bf16.vlgmr.msra.gmra.mxu0 %v619_v13 }
 0x10b   :  { %v2769_v23 = vpop.f32.mrf.mxu0 }
 0x10d   :  { %v2770_v24 = vpop.f32.mrf.mxu0  ;;  %v2791_v25 = vpop.f32.mrf.mxu1 }
 0x10e   :  { %v2771_v49 = vadd.f32 %v2770_v24, %v2769_v23 }
 0x10f   :  { %v2772_v26 = vpop.f32.mrf.mxu0  ;;  %v2792_v27 = vpop.f32.mrf.mxu1 }
 0x110   :  { %v2022_v54 = vadd.f32 %v2771_v49, %v2573_v50  ;;  %v2793_v55 = vadd.f32 %v2792_v27, %v2791_v25 }
 0x111   :  { %v2773_v28 = vpop.f32.mrf.mxu0  ;;  %v2794_v29 = vpop.f32.mrf.mxu1 }
 0x112   :  { %v2774_v53 = vadd.f32 %v2773_v28, %v2772_v26  ;;  %v2063_v61 = vadd.f32 %v2793_v55, %v2022_v54 }
 0x113   :  { %v2795_v31 = vpop.f32.mrf.mxu1 }
 0x114   :  { %v2025_v58 = vadd.f32 %v2774_v53, %v2573_v50  ;;  %v2796_v59 = vadd.f32 %v2795_v31, %v2794_v29  ;;  %v2744_v50 = vld [vmem:[%s3470_s4] ss:$0 sm:$0xff] }
 0x116   :  { %v2066_v1 = vadd.f32 %v2796_v59, %v2025_v58 }
 0x12b   :  { %v2813_v30 = vpop.f32.mrf.mxu0 }
 0x12d   :  { %v2814_v32 = vpop.f32.mrf.mxu0  ;;  %v2835_v33 = vpop.f32.mrf.mxu1 }
 0x12e   :  { %v2815_v60 = vadd.f32 %v2814_v32, %v2813_v30 }
 0x12f   :  { %v2816_v34 = vpop.f32.mrf.mxu0  ;;  %v2836_v35 = vpop.f32.mrf.mxu1 }
 0x130   :  { %v2104_v2 = vadd.f32 %v2815_v60, %v2063_v61  ;;  %v2837_v3 = vadd.f32 %v2836_v35, %v2835_v33 }
 0x131   :  { %v2817_v37 = vpop.f32.mrf.mxu0  ;;  %v2838_v38 = vpop.f32.mrf.mxu1 }
 0x132   :  { %v2818_v62 = vadd.f32 %v2817_v37, %v2816_v34  ;;  %v2145_v36 = vadd.f32 %v2837_v3, %v2104_v2 }
 0x133   :  { %v2839_v40 = vpop.f32.mrf.mxu1 }
 0x134   :  { %v2107_v5 = vadd.f32 %v2818_v62, %v2066_v1  ;;  %v2840_v6 = vadd.f32 %v2839_v40, %v2838_v38 }
 0x136   :  { %v2148_v12 = vadd.f32 %v2840_v6, %v2107_v5 }
 0x14b   :  { %v2857_v39 = vpop.f32.mrf.mxu0 }
 0x14d   :  { %v2858_v41 = vpop.f32.mrf.mxu0  ;;  %v2879_v42 = vpop.f32.mrf.mxu1 }
 0x14e   :  { %v2859_v7 = vadd.f32 %v2858_v41, %v2857_v39 }
 0x14f   :  { %v2860_v43 = vpop.f32.mrf.mxu0  ;;  %v2880_v44 = vpop.f32.mrf.mxu1 }
 0x150   :  { %v2186_v13 = vadd.f32 %v2859_v7, %v2145_v36  ;;  %v2881_v14 = vadd.f32 %v2880_v44, %v2879_v42 }
 0x151   :  { %v2861_v45 = vpop.f32.mrf.mxu0  ;;  %v2882_v46 = vpop.f32.mrf.mxu1 }
 0x152   :  { %v2862_v9 = vadd.f32 %v2861_v45, %v2860_v43  ;;  %v2227_v20 = vadd.f32 %v2881_v14, %v2186_v13 }
 0x153   :  { %v2883_v48 = vpop.f32.mrf.mxu1 }
 0x154   :  { %v2189_v15 = vadd.f32 %v2862_v9, %v2148_v12  ;;  %v2884_v16 = vadd.f32 %v2883_v48, %v2882_v46 }
 0x156   :  { %v2230_v22 = vadd.f32 %v2884_v16, %v2189_v15 }
 0x16b   :  { %v2901_v47 = vpop.f32.mrf.mxu0 }
 0x16d   :  { %v2902_v51 = vpop.f32.mrf.mxu0  ;;  %v2923_v52 = vpop.f32.mrf.mxu1 }
 0x16e   :  { %v2903_v17 = vadd.f32 %v2902_v51, %v2901_v47 }
 0x16f   :  { %v2904_v56 = vpop.f32.mrf.mxu0  ;;  %v2924_v57 = vpop.f32.mrf.mxu1 }
 0x170   :  { %v2268_v23 = vadd.f32 %v2903_v17, %v2227_v20  ;;  %v2925_v24 = vadd.f32 %v2924_v57, %v2923_v52 }
 0x171   :  { %v2905_v63 = vpop.f32.mrf.mxu0  ;;  %v2926_v0 = vpop.f32.mrf.mxu1 }
 0x172   :  { %v2906_v21 = vadd.f32 %v2905_v63, %v2904_v56  ;;  %v2309_v30 = vadd.f32 %v2925_v24, %v2268_v23 }
 0x173   :  { %v2927_v8 = vpop.f32.mrf.mxu1 }
 0x174   :  { %v2271_v27 = vadd.f32 %v2906_v21, %v2230_v22  ;;  %v2928_v28 = vadd.f32 %v2927_v8, %v2926_v0 }
 0x176   :  { %v2312_v33 = vadd.f32 %v2928_v28, %v2271_v27 }
 0x18b   :  { %v2945_v4 = vpop.f32.mrf.mxu0 }
 0x18d   :  { %v2946_v10 = vpop.f32.mrf.mxu0  ;;  %v2967_v11 = vpop.f32.mrf.mxu1 }
 0x18e   :  { %v2947_v29 = vadd.f32 %v2946_v10, %v2945_v4 }
 0x18f   :  { %v2948_v18 = vpop.f32.mrf.mxu0  ;;  %v2968_v19 = vpop.f32.mrf.mxu1 }
 0x190   :  { %v2350_v34 = vadd.f32 %v2947_v29, %v2309_v30  ;;  %v2969_v35 = vadd.f32 %v2968_v19, %v2967_v11 }
 0x191   :  { %v2949_v25 = vpop.f32.mrf.mxu0  ;;  %v2970_v26 = vpop.f32.mrf.mxu1 }
 0x192   :  { %v2950_v31 = vadd.f32 %v2949_v25, %v2948_v18  ;;  %v2391_v40 = vadd.f32 %v2969_v35, %v2350_v34 }
 0x193   :  { %v2971_v32 = vpop.f32.mrf.mxu1 }
 0x194   :  { %v2353_v37 = vadd.f32 %v2950_v31, %v2312_v33  ;;  %v2972_v38 = vadd.f32 %v2971_v32, %v2970_v26 }
 0x196   :  { %v2394_v43 = vadd.f32 %v2972_v38, %v2353_v37 }
 0x1af   :  { %v2431_v39 = vpop.f32.mrf.mxu0 }
 0x1b0   :  { %v2432_v42 = vadd.f32 %v2431_v39, %v2391_v40 }
 0x1b1   :  { %v2433_v41 = vpop.f32.mrf.mxu0 }
 0x1b2   :  { %v2438_v47 = vmax.f32 %v2432_v42, 0.0 }
 0x1b3   :  { %v2434_v44 = vpop.f32.mrf.mxu0 }
 0x1b4   :  { %v2435_v45 = vadd.f32 %v2434_v44, %v2394_v43 }
 0x1b5   :  { %v2436_v46 = vpop.f32.mrf.mxu0 }
 0x1b6   :  { %v2439_v48 = vmax.f32 %v2435_v45, 0.0 }
 0x1b8   :  { %v2440_v49 = vpack.c.bf16 %v2439_v48, %v2438_v47 }
 0x1ba   :  { %2999 = vmatmul.mubr.bf16.vlgmr.msra.gmra.mxu1 %v2440_v49 }
 0x27a   :  { %v2546_v51 = vpop.f32.mrf.mxu1 }
 0x27b   :  { %v2547_v52 = vadd.f32 %v2744_v50, %v2546_v51 }
 0x27c   :  { %v3000_v53 = vpop.f32.mrf.mxu1 }
 0x27d   :  { %2553 = vst [vmem:[#allocation8] sm:$0xff] %v2547_v52 }
 0x27e   :  { %v2549_v54 = vpop.f32.mrf.mxu1 }
 0x27f   :  { %v2550_v55 = vadd.f32 %v2744_v50, %v2549_v54 }
 0x280   :  { %v3001_v56 = vpop.f32.mrf.mxu1 }
 0x281   :  { %2554 = vst [vmem:[#allocation8 + $0x8] sm:$0xff] %v2550_v55 }
 0x282   :  { %2559 = vsyncadd [#allocation4], 224  ;;  %s3354_s13 = smov [#allocation8]  }
 0x283   :  { %s2560_s14 = sshll.u32 %s3354_s13, 4  ;;  %s2561_s14 = int_to_ptr.vmem [resolvable:$true] %s2560_s14 }
 0x284   :  { %s3317_s15 = scalar_lea.vmem %s2561_s14, 32  ;;  %s3321_s16 = scalar_lea.vmem %s2561_s14, 256 }
 0x285   :  { %p3318_p1 = scmp.ne.s32.totalorder %s2561_s14, %s3317_s15  ;;  %p3322_p2 = scmp.lt.s32.totalorder %s2561_s14, %s2561_s14 }
 0x286   :  { %p3323_p3 = scmp.lt.s32.totalorder %s3321_s16, %s3317_s15 }
 0x288   :  { %p3324_p4 = por %p3323_p3, %p3322_p2 }
 0x28a   :  { %p3325_p5 = pnand %p3324_p4, %p3318_p1 }
 0x28c   :  { %3328 = shalt.err (!%p3325_p5)
}
 0x28d   :  { %s3355_s4 = smov 32   ;;  %s3356_s17 = smov 2  }
 0x28e   :  { %2566 = dma.vmem_to_hbm [thread:$0]  %s2561_s14, 32, %s3471_s5, [#allocation4], %s3355_s4, %s3355_s4, %s3356_s17  }
 0x28f   :  { %3341 = dma.done.wait [#allocation4], 256  }
 0x290   :  { %3342 = vsyncadd [#allocation4], 4294967040 }
 0x291   :  { %2570 = vsyncpa [#allocation3], 1 }
 0x292   :  { %2571 = vsyncpa [#allocation6], 1 }
 0x293   :  { %2572 = vsyncpa [#allocation4], 1 }

</bundles_post_ra>
